<compile_context>
chip_gen: v5e
topology: v5e:2x2
jax: 0.10.0
libtpu: 0.0.40
codegen_flags: <defaults>
</compile_context>

<pallas_src>
import jax
import jax.numpy as jnp
from jax.experimental import pallas as pl
from jax.experimental.pallas import tpu as pltpu

EPS = 1e-5


def afusion_kernel(x_tf_ref, x_cnn_ref, wg_ref, ec_ref, o_ref):
    # x_tf_ref / x_cnn_ref / o_ref: (C, TN); wg_ref: (C, 1); ec_ref: (C, 1)
    xc = x_cnn_ref[...].astype(jnp.float32)                     # (C, TN)
    xt = x_tf_ref[...].astype(jnp.float32)                      # (C, TN)
    wg = wg_ref[...]                                            # (C, 1) f32

    inv_c = 1.0 / xc.shape[0]
    mu = jnp.sum(xc, axis=0, keepdims=True) * inv_c             # (1, TN)
    d = xc - mu                                                 # centered (two-pass var)
    var = jnp.sum(d * d, axis=0, keepdims=True) * inv_c         # biased var (LayerNorm)
    s = jnp.sum(d * wg, axis=0, keepdims=True)                  # (1, TN)

    # Fused LayerNorm(C) + Linear(C->1, no bias).  The +c0 bias and the
    # channel-mask term are folded into exp(-(ch+c0)) in the wrapper.
    spatial = s * jax.lax.rsqrt(var + EPS)                      # (1, TN)

    # sigmoid(spatial + ch + c0) = 1 / (1 + exp(-(ch+c0)) * exp(-spatial))
    e_s = jnp.exp(-spatial)                                     # (1, TN) single EUP row
    mask = 1.0 / (1.0 + ec_ref[...] * e_s)                      # (C, TN)

    o_ref[...] = (xt + mask * (xc - xt)).astype(o_ref.dtype)


def _vmem_capacity_bytes():
    try:
        info = pltpu.get_tpu_info()
        cap = int(getattr(info, "vmem_capacity_bytes", 0))
        if cap > 0:
            return cap
    except Exception:
        pass
    return 64 * 1024 * 1024  # conservative default (v7x per-core VMEM)


def _plan_tiles(C, N, itemsize, max_tile_n=4096):
    """Pick a lane-dense N tile and an explicit VMEM limit.

    Per lane-column of a tile we hold:
      * 3 I/O blocks (2 in + 1 out), double-buffered : 6 * C * itemsize bytes
      * ~4 live f32 compute temporaries (xc, xt, d, mask/blend): 16 * C bytes
    """
    cap = _vmem_capacity_bytes()
    # Keep the streaming working set to ~1/3 of physical VMEM (<= 40 MiB):
    # preserves double-buffer headroom on 64 MiB v7x and lets v5e/v6e reach the
    # 1024-4096 lane tile range that saturates HBM bandwidth.
    budget = min(cap // 3, 40 * 1024 * 1024)
    per_col = C * (6 * itemsize + 4 * 4)
    tn = max(128, (budget // per_col // 128) * 128)
    tn = min(tn, max_tile_n, pl.cdiv(N, 128) * 128)
    est = tn * per_col + (2 << 20)                              # + small vectors / slack
    vmem_limit = int(min(max(est * 3 // 2, 32 * 1024 * 1024), cap - (8 << 20)))
    return tn, vmem_limit


def afusion(x_tf, x_cnn, params):
    B, C, W, H, D = x_tf.shape
    N = W * H * D
    dtype = x_tf.dtype
    x_tf_f = x_tf.reshape(B, C, N)
    x_cnn_f = x_cnn.reshape(B, C, N)

    # ---- channel mask (tiny MLP) in plain XLA, batched over B ----
    # TODO(synk): this is an unavoidable second HBM pass over x_tf (the mask at
    # every position depends on the mean over all N); keep it fused as an f32
    # reduction rather than materializing a cast copy.
    avg = jnp.mean(x_tf_f, axis=2, dtype=jnp.float32)             # (B, C)
    h = avg @ params["w1"].T                                      # (B, Cr)
    h = h * jax.nn.sigmoid(h)                                     # SiLU
    mu2 = h.mean(-1, keepdims=True)
    var2 = ((h - mu2) ** 2).mean(-1, keepdims=True)
    hn = (h - mu2) * jax.lax.rsqrt(var2 + EPS)
    hn = hn * params["ln2_gamma"] + params["ln2_beta"]
    ch = hn @ params["w2"].T                                      # (B, C)

    # ---- constants for the fused spatial LayerNorm + Linear ----
    wg = (params["w_spatial"] * params["ln1_gamma"]).astype(jnp.float32).reshape(C, 1)
    c0 = jnp.sum(params["w_spatial"] * params["ln1_beta"]).astype(jnp.float32)
    # factored sigmoid: per-(B,C) factor exp(-(ch + c0))
    ec = jnp.exp(-(ch + c0)).reshape(B, C, 1).astype(jnp.float32)

    # ---- lane-dense tiling of N (no pad; ragged last tile store is masked) ----
    tn, vmem_limit = _plan_tiles(C, N, jnp.dtype(dtype).itemsize)
    grid_n = pl.cdiv(N, tn)
    if B == 1 and grid_n < 2 and N > 128:
        # keep both v7x TensorCores busy: force >= 2 parallel grid steps
        tn = max(128, pl.cdiv(pl.cdiv(N, 2), 128) * 128)
        grid_n = pl.cdiv(N, tn)
    grid = (B, grid_n)

    out = pl.pallas_call(
        afusion_kernel,
        out_shape=jax.ShapeDtypeStruct((B, C, N), dtype),
        grid_spec=pltpu.PrefetchScalarGridSpec(
            num_scalar_prefetch=0,
            grid=grid,
            in_specs=[
                pl.BlockSpec((pl.Squeezed(), C, tn), lambda b, n: (b, 0, n)),  # x_tf
                pl.BlockSpec((pl.Squeezed(), C, tn), lambda b, n: (b, 0, n)),  # x_cnn
                pl.BlockSpec((C, 1), lambda b, n: (0, 0)),                     # wg
                pl.BlockSpec((pl.Squeezed(), C, 1), lambda b, n: (b, 0, 0)),   # exp(-(ch+c0))
            ],
            out_specs=pl.BlockSpec((pl.Squeezed(), C, tn), lambda b, n: (b, 0, n)),
        ),
        compiler_params=pltpu.CompilerParams(
            dimension_semantics=("parallel", "parallel"),
            vmem_limit_bytes=vmem_limit),
    )(x_tf_f, x_cnn_f, wg, ec)

    return out.reshape(B, C, W, H, D)


def afusion_ref(x_tf, x_cnn, params):
    """Pure-JAX reference matching the PyTorch forward exactly."""
    B, C, W, H, D = x_tf.shape
    N = W * H * D
    xt = x_tf.reshape(B, C, N)
    xc = x_cnn.reshape(B, C, N)

    # fc_spatial(x_cnn.permute(0,2,1)) : LayerNorm(C) + Linear(C,1)
    xp = jnp.transpose(xc, (0, 2, 1))                                  # (B, N, C)
    mu = xp.mean(-1, keepdims=True)
    var = ((xp - mu) ** 2).mean(-1, keepdims=True)
    ln = (xp - mu) / jnp.sqrt(var + EPS) * params["ln1_gamma"] + params["ln1_beta"]
    spatial = ln @ params["w_spatial"].reshape(C, 1)                   # (B, N, 1)
    spatial = jnp.transpose(spatial, (0, 2, 1))                        # (B, 1, N)

    # fc_channel(avg_pool(x_tf).permute(0,2,1))
    avg = xt.mean(-1, keepdims=True)                                   # (B, C, 1)
    a = jnp.transpose(avg, (0, 2, 1))                                  # (B, 1, C)
    h = a @ params["w1"].T                                             # (B, 1, Cr)
    h = h * jax.nn.sigmoid(h)
    mu2 = h.mean(-1, keepdims=True)
    var2 = ((h - mu2) ** 2).mean(-1, keepdims=True)
    hn = (h - mu2) / jnp.sqrt(var2 + EPS) * params["ln2_gamma"] + params["ln2_beta"]
    ch = hn @ params["w2"].T                                           # (B, 1, C)
    ch = jnp.transpose(ch, (0, 2, 1))                                  # (B, C, 1)

    mask = jax.nn.sigmoid(spatial + ch)                                # (B, C, N)
    out = xc * mask + xt * (1.0 - mask)
    return out.reshape(B, C, W, H, D)


def init_params(key, channel, reduction=16):
    cr = channel // reduction
    k1, k2, k3, k4, k5, k6, k7 = jax.random.split(key, 7)
    return {
        "ln1_gamma": 1.0 + 0.1 * jax.random.normal(k1, (channel,), jnp.float32),
        "ln1_beta": 0.1 * jax.random.normal(k2, (channel,), jnp.float32),
        "w_spatial": jax.random.normal(k3, (channel,), jnp.float32) / jnp.sqrt(channel),
        "w1": jax.random.normal(k4, (cr, channel), jnp.float32) / jnp.sqrt(channel),
        "ln2_gamma": 1.0 + 0.1 * jax.random.normal(k5, (cr,), jnp.float32),
        "ln2_beta": 0.1 * jax.random.normal(k6, (cr,), jnp.float32),
        "w2": jax.random.normal(k7, (channel, cr), jnp.float32) / jnp.sqrt(cr),
    }


if __name__ == "__main__":
    B, C, W, H, D = 2, 32, 4, 4, 8   # N = W*H*D = 128
    reduction = 16

    key = jax.random.PRNGKey(0)
    kx, ky, kp = jax.random.split(key, 3)
    x_tf = jax.random.normal(kx, (B, C, W, H, D), jnp.float32)
    x_cnn = jax.random.normal(ky, (B, C, W, H, D), jnp.float32)
    params = init_params(kp, C, reduction)

    out = afusion(x_tf, x_cnn, params)
    out = jax.block_until_ready(out)

    ref = afusion_ref(x_tf, x_cnn, params)
    assert out.shape == (B, C, W, H, D)
    assert jnp.allclose(out, ref, rtol=1e-4, atol=1e-4), "mismatch vs pure-JAX reference"

    print("KERNEL_OK")
</pallas_src>

<mosaic_0001>
module attributes {stable_mosaic.version = 11 : i64} {
  func.func @afusion_kernel(%arg0: i32, %arg1: i32, %arg2: memref<1x32x128xf32, #tpu.memory_space<vmem>>, %arg3: memref<1x32x128xf32, #tpu.memory_space<vmem>>, %arg4: memref<32x1xf32, #tpu.memory_space<vmem>>, %arg5: memref<1x32x1xf32, #tpu.memory_space<vmem>>, %arg6: memref<1x32x128xf32, #tpu.memory_space<vmem>>) attributes {dimension_semantics = [#tpu.dimension_semantics<parallel>, #tpu.dimension_semantics<parallel>], iteration_bounds = array<i64: 2, 1>, scalar_prefetch = 0 : i64, scratch_operands = 0 : i64, tpu.core_type = #tpu.core_type<tc>, window_params = [{transform_indices = @transform_0, window_bounds = array<i64: 1, 32, 128>}, {transform_indices = @transform_1, window_bounds = array<i64: 1, 32, 128>}, {pipeline_mode = #tpu.pipeline_mode<synchronous>, transform_indices = @transform_2, window_bounds = array<i64: 32, 1>}, {transform_indices = @transform_3, window_bounds = array<i64: 1, 32, 1>}, {transform_indices = @transform_4, window_bounds = array<i64: 1, 32, 128>}]} {
    %c0 = arith.constant 0 : index
    %c0_0 = arith.constant 0 : index
    %c0_1 = arith.constant 0 : index
    %0 = vector.load %arg3[%c0, %c0_0, %c0_1] : memref<1x32x128xf32, #tpu.memory_space<vmem>>, vector<1x32x128xf32>
    %1 = vector.shape_cast %0 : vector<1x32x128xf32> to vector<32x128xf32>
    %c0_2 = arith.constant 0 : index
    %c0_3 = arith.constant 0 : index
    %c0_4 = arith.constant 0 : index
    %2 = vector.load %arg2[%c0_2, %c0_3, %c0_4] : memref<1x32x128xf32, #tpu.memory_space<vmem>>, vector<1x32x128xf32>
    %3 = vector.shape_cast %2 : vector<1x32x128xf32> to vector<32x128xf32>
    %c0_5 = arith.constant 0 : index
    %c0_6 = arith.constant 0 : index
    %4 = vector.load %arg4[%c0_5, %c0_6] : memref<32x1xf32, #tpu.memory_space<vmem>>, vector<32x1xf32>
    %cst = arith.constant dense<0.000000e+00> : vector<128xf32>
    %5 = vector.multi_reduction <add>, %1, %cst [0] : vector<32x128xf32> to vector<128xf32>
    %6 = vector.shape_cast %5 : vector<128xf32> to vector<1x128xf32>
    %cst_7 = arith.constant 3.125000e-02 : f32
    %7 = vector.broadcast %cst_7 : f32 to vector<1x128xf32>
    %8 = arith.mulf %6, %7 : vector<1x128xf32>
    %9 = vector.broadcast %8 : vector<1x128xf32> to vector<32x128xf32>
    %10 = arith.subf %1, %9 : vector<32x128xf32>
    %11 = arith.mulf %10, %10 : vector<32x128xf32>
    %cst_8 = arith.constant dense<0.000000e+00> : vector<128xf32>
    %12 = vector.multi_reduction <add>, %11, %cst_8 [0] : vector<32x128xf32> to vector<128xf32>
    %13 = vector.shape_cast %12 : vector<128xf32> to vector<1x128xf32>
    %cst_9 = arith.constant 3.125000e-02 : f32
    %14 = vector.broadcast %cst_9 : f32 to vector<1x128xf32>
    %15 = arith.mulf %13, %14 : vector<1x128xf32>
    %16 = vector.broadcast %4 : vector<32x1xf32> to vector<32x128xf32>
    %17 = arith.mulf %10, %16 : vector<32x128xf32>
    %cst_10 = arith.constant dense<0.000000e+00> : vector<128xf32>
    %18 = vector.multi_reduction <add>, %17, %cst_10 [0] : vector<32x128xf32> to vector<128xf32>
    %19 = vector.shape_cast %18 : vector<128xf32> to vector<1x128xf32>
    %cst_11 = arith.constant 9.99999974E-6 : f32
    %20 = vector.broadcast %cst_11 : f32 to vector<1x128xf32>
    %21 = arith.addf %15, %20 : vector<1x128xf32>
    %22 = math.rsqrt %21 : vector<1x128xf32>
    %23 = arith.mulf %19, %22 : vector<1x128xf32>
    %cst_12 = arith.constant 0.000000e+00 : f32
    %24 = vector.broadcast %cst_12 : f32 to vector<1x128xf32>
    %25 = arith.subf %24, %23 : vector<1x128xf32>
    %26 = math.exp %25 : vector<1x128xf32>
    %c0_13 = arith.constant 0 : index
    %c0_14 = arith.constant 0 : index
    %c0_15 = arith.constant 0 : index
    %27 = vector.load %arg5[%c0_13, %c0_14, %c0_15] : memref<1x32x1xf32, #tpu.memory_space<vmem>>, vector<1x32x1xf32>
    %28 = vector.shape_cast %27 : vector<1x32x1xf32> to vector<32x1xf32>
    %29 = vector.broadcast %28 : vector<32x1xf32> to vector<32x128xf32>
    %30 = vector.broadcast %26 : vector<1x128xf32> to vector<32x128xf32>
    %31 = arith.mulf %29, %30 : vector<32x128xf32>
    %cst_16 = arith.constant 1.000000e+00 : f32
    %32 = vector.broadcast %cst_16 : f32 to vector<32x128xf32>
    %33 = arith.addf %32, %31 : vector<32x128xf32>
    %cst_17 = arith.constant 1.000000e+00 : f32
    %34 = vector.broadcast %cst_17 : f32 to vector<32x128xf32>
    %35 = arith.divf %34, %33 : vector<32x128xf32>
    %36 = arith.subf %1, %3 : vector<32x128xf32>
    %37 = arith.mulf %35, %36 : vector<32x128xf32>
    %38 = arith.addf %3, %37 : vector<32x128xf32>
    %c0_18 = arith.constant 0 : index
    %c0_19 = arith.constant 0 : index
    %c0_20 = arith.constant 0 : index
    %39 = vector.load %arg6[%c0_18, %c0_19, %c0_20] : memref<1x32x128xf32, #tpu.memory_space<vmem>>, vector<1x32x128xf32>
    %40 = vector.shape_cast %39 : vector<1x32x128xf32> to vector<32x128xf32>
    %41 = vector.shape_cast %38 : vector<32x128xf32> to vector<1x32x128xf32>
    tpu.vector_store %arg6[%c0_18, %c0_19, %c0_20], %41 {strides = array<i32>} : memref<1x32x128xf32, #tpu.memory_space<vmem>>, vector<1x32x128xf32>,
    return
  }
  func.func @transform_0(%arg0: i32, %arg1: i32) -> (i32, i32, i32) {
    %c0_i32 = arith.constant 0 : i32
    %c0_i32_0 = arith.constant 0 : i32
    return %arg0, %c0_i32, %arg1 : i32, i32, i32
  }
  func.func @transform_1(%arg0: i32, %arg1: i32) -> (i32, i32, i32) {
    %c0_i32 = arith.constant 0 : i32
    %c0_i32_0 = arith.constant 0 : i32
    return %arg0, %c0_i32, %arg1 : i32, i32, i32
  }
  func.func @transform_2(%arg0: i32, %arg1: i32) -> (i32, i32) {
    %c0_i32 = arith.constant 0 : i32
    %c0_i32_0 = arith.constant 0 : i32
    %c0_i32_1 = arith.constant 0 : i32
    return %c0_i32, %c0_i32_0 : i32, i32
  }
  func.func @transform_3(%arg0: i32, %arg1: i32) -> (i32, i32, i32) {
    %c0_i32 = arith.constant 0 : i32
    %c0_i32_0 = arith.constant 0 : i32
    %c0_i32_1 = arith.constant 0 : i32
    return %arg0, %c0_i32, %c0_i32_0 : i32, i32, i32
  }
  func.func @transform_4(%arg0: i32, %arg1: i32) -> (i32, i32, i32) {
    %c0_i32 = arith.constant 0 : i32
    %c0_i32_0 = arith.constant 0 : i32
    return %arg0, %c0_i32, %arg1 : i32, i32, i32
  }
}

</mosaic_0001>

<bundles_post_ra>
// kernel: tpu_custom_call.1
= control target key start
LH: loop header
LB: loop body
LE: loop exit
PB: predicated region body
PF: predicated region fallthrough
CT: control target
= control target key end

     0   :  { %9 = vsyncpa [#allocation3], 0  ;;  %s1092_s0 = inlined_call_operand.vmem [shape: f32[2,32,128], index: 0, kind: input, shape index: {}]   ;;  %s1093_s1 = inlined_call_operand.hbm [shape: f32[2,32,128], index: 1, kind: input, shape index: {}]   ;;  %s1094_s2 = inlined_call_operand.vmem [shape: f32[32,1], index: 2, kind: input, shape index: {}]   ;;  %s1095_s3 = inlined_call_operand.vmem [shape: f32[2,32,1], index: 3, kind: input, shape index: {}]   ;;  %s1096_s4 = inlined_call_operand.hbm [shape: f32[2,32,128], index: 4, kind: output, shape index: {}]  }
   0x1   :  { %11 = vsyncpa [#allocation3 + $0x1], 0 }
   0x2   :  { %12 = vsyncpa [#allocation4], 0 }
   0x3   :  { %14 = vsyncpa [#allocation4 + $0x1], 0  ;;  %s863_s15 = smov 0   ;;  %s865_s16 = smov 0  }
   0x4   :  { %s867_s17 = smov 0   ;;  %s869_s18 = smov 0  }
   0x5   :  { %s871_s19 = smov 0   ;;  %s873_s20 = smov 0  }
   0x6 LB: > { %s614_s21 = sadd.s32 4294967295, %s831_s20   ;;  %s615_s22 = sadd.s32 4294967294, %s831_s20   ;;  %s831_s20 = sphi %s873_s20, %s20_s20   ;;  %s827_s19 = sphi %s871_s19, %s1109_s19   ;;  %s823_s18 = sphi %s869_s18, %s1108_s18   ;;  %s819_s17 = sphi %s867_s17, %s1107_s17   ;;  %s815_s16 = sphi %s865_s16, %s1106_s16   ;;  %s811_s15 = sphi %s863_s15, %s1105_s15  }
   0x7   : > { %s32_s23 = sadd.s32 1, %s827_s19  ;;  %s69_s24 = sadd.s32 1, %s819_s17 }
   0x8   : > { %p34_p0 = scmp.ge.s32.totalorder %s32_s23, 2  ;;  %p76_p1 = scmp.ne.s32.totalorder %s819_s17, %s815_s16 }
   0x9   : > { %p77_p2 = scmp.eq.s32.totalorder %s831_s20, 0  ;;  %p82_p3 = scmp.ne.s32.totalorder %s815_s16, %s811_s15 }
   0xa   : > { %s1111_s23 = smov (%p34_p0, %s32_s23), 0  ;;  %p83_p5 = scmp.eq.s32.totalorder %s614_s21, 0 }
   0xb   : > { %p904_p4 = por %p77_p2, %p76_p1  ;;  %s64_s26 = ssub.s32 %s827_s19, %s1111_s23 }
   0xc   : > { %p155_p6 = scmp.eq.s32.totalorder %s614_s21, 1  ;;  %p67_p7 = scmp.eq.s32.totalorder %s64_s26, 0 }
   0xd   : > { %p910_p8 = por %p83_p5, %p82_p3  ;;  %p161_p10 = scmp.eq.s32.totalorder %s615_s22, 1 }
   0xe   : > { %p914_p9 = por %p155_p6, %p76_p1  ;;  %p617_p12 = scmp.ge.s32.totalorder %s831_s20, 2 }
   0xf   : > { %s919_s29 = scalar_select %p67_p7, %s819_s17, %s69_s24  }
  0x10   : > { %p921_p11 = por %p161_p10, %p82_p3  ;;  %p649_p13 = scmp.lt.s32.totalorder %s831_s20, 2 }
  0x11   : > { %s195_s5 = sand.u32 1, %s819_s17   ;;  %s633_s7 = sshll.u32 %s827_s19, 5 }
  0x12   : > { %s618_s6 = sshll.u32 %s195_s5, 5  ;;  %s205_s10 = scalar_lea.hbm %s1093_s1, %s633_s7 }
  0x13   : > { %s199_s11 = scalar_lea.vmem [#allocation2], %s618_s6  ;;  %s206_s13 = sshll.u32 %s205_s10, 4  ;;  %s207_s13 = int_to_ptr.hbm [resolvable:$true] %s206_s13 }
  0x14   : > { %s208_s12 = sshll.u32 %s199_s11, 4  ;;  %p642_p0 = pnand %p649_p13, %p904_p4  ;;  %s209_s12 = int_to_ptr.vmem [resolvable:$true] %s208_s12 }
  0x15   : > { %p621_p1 = scmp.ge.s32.totalorder %s831_s20, 1  ;;  %s196_s14 = scalar_lea.sflag [#allocation3], %s195_s5 }
  0x16   : > { %s833_s21 = smov 128   ;;  %s834_s22 = smov 8  }
  0x17   : > { %644 = dma.hbm_to_vmem [thread:$0]  (!%p642_p0), %s207_s13, 512, %s209_s12, %s196_s14, %s833_s21, %s833_s21, %s834_s22  }
  0x18   : > { %p224_p2 = scmp.lt.s32.totalorder %s831_s20, 3 }
  0x1a   : > { %p225_p3 = pnand %p621_p1, %p224_p2 }
  0x1b   : > { %s937_s24 = sand.u32 (!%p225_p3), 1, %s815_s16  }
  0x1c   : > { %228 = sbr.rel (%p225_p3) target bundleno = 225 (0xe1), region = 36  ;;  %s622_s26 = sshll.u32 (!%p225_p3), %s937_s24, 5 }
  0x1d   : > { %s231_s6 = scalar_lea.sflag (!%p225_p3), [#allocation3], %s937_s24  ;;  %s943_s25 = scalar_lea.vmem (!%p225_p3), [#allocation2], %s622_s26 }
  0x21   : > { %802 = dma.done.wait (%p910_p8), %s231_s6, 512  }
  0x22   : > { %804 = vsyncadd (%p910_p8), %s231_s6, 4294966784  ;;  %p273_p4 = scmp.lt.s32.totalorder %s823_s18, 1  ;;  %v835_v0 = vmov 0   ;;  %v296_v1 = vld [vmem:[%s1094_s2 + $0x10] sm:$0xff]  ;;  %v294_v2 = vld [vmem:[%s1094_s2] sm:$0xff]  ;;  %s272_s11 = scalar_lea.vmem [#allocation5], %s622_s26 }
  0x23   : > { %705 = vset.pattern.permute.xlu1 %v835_v0  ;;  %704 = vset.pattern.permute.xlu0 %v835_v0  ;;  %v297_v4 = vld [vmem:[%s1094_s2 + $0x18] sm:$0xff]  ;;  %v295_v5 = vld [vmem:[%s1094_s2 + $0x8] sm:$0xff]  ;;  %v972_v9 = vld [vmem:[%s943_s25] sm:$0xff]  ;;  %s496_s27 = sshll.u32 %s272_s11, 4  ;;  %s483_s26 = scalar_lea.sflag [#allocation4], %s937_s24  ;;  %s497_s27 = int_to_ptr.vmem [resolvable:$true] %s496_s27 }
  0x24   : > { %s951_s5 = scalar_select %p273_p4, %s823_s18, 1  ;;  %706 = vset.pattern.permute.xlu2 %v835_v0  ;;  %338 = vperm.xlu1 %705, %v296_v1   ;;  %v975_v10 = vld [vmem:[%s943_s25 + $0x8] sm:$0xff]  ;;  %v980_v12 = vld [vmem:[%s943_s25 + $0x10] sm:$0xff]  ;;  %v984_v14 = vld [vmem:[%s943_s25 + $0x18] sm:$0xff] }
  0x25   : > { %328 = vperm.xlu0 %704, %v294_v2   ;;  %v298_v11 = vadd.f32 %v975_v10, %v972_v9  ;;  %s769_s6 = scalar_lea.hbm %s1096_s4, 64 }
  0x26   : > { %s634_s7 = sshll.u32 %s951_s5, 5  ;;  %s636_s5 = sshll.u32 %s823_s18, 5 }
  0x27   : > { %s285_s13 = scalar_lea.vmem %s1095_s3, %s634_s7  ;;  %v299_v13 = vadd.f32 %v298_v11, %v980_v12  ;;  %s996_s9 = scalar_lea.vmem %s1092_s0, %s634_s7 }
  0x28   : > { %v374_v3 = vld [vmem:[%s285_s13] sm:$0xff]  ;;  %v375_v6 = vld [vmem:[%s285_s13 + $0x8] sm:$0xff]  ;;  %v377_v7 = vld [vmem:[%s285_s13 + $0x18] sm:$0xff]  ;;  %s495_s10 = scalar_lea.hbm %s1096_s4, %s636_s5 }
  0x29   : > { %380 = vperm.xlu2 %706, %v374_v3   ;;  %v376_v8 = vld [vmem:[%s285_s13 + $0x10] sm:$0xff]  ;;  %v300_v15 = vadd.f32 %v299_v13, %v984_v14  ;;  %v999_v35 = vld [vmem:[%s996_s9] sm:$0xff]  ;;  %v1002_v36 = vld [vmem:[%s996_s9 + $0x8] sm:$0xff]  ;;  %s498_s12 = sshll.u32 %s495_s10, 4  ;;  %s499_s12 = int_to_ptr.hbm [resolvable:$true] %s498_s12 }
  0x2a   : > { %v1005_v37 = vld [vmem:[%s996_s9 + $0x10] sm:$0xff]  ;;  %v466_v38 = vsub.f32 %v972_v9, %v999_v35  ;;  %v467_v39 = vsub.f32 %v975_v10, %v1002_v36  ;;  %s763_s13 = sshra.s32 %s499_s12, 4  ;;  %s764_s13 = int_to_ptr.hbm [resolvable:$true] %s763_s13 }
  0x2b   : > { %v301_v16 = vrot.slane %v300_v15, 4  ;;  %v468_v40 = vsub.f32 %v980_v12, %v1005_v37  ;;  %s765_s14 = scalar_lea.hbm %s764_s13, 32  ;;  %p770_p8 = scmp.lt.s32.totalorder %s764_s13, %s1096_s4 }
  0x2c   : > { %343 = vperm.xlu1 %705, %v297_v4   ;;  %p766_p5 = scmp.ne.s32.totalorder %s764_s13, %s765_s14  ;;  %p771_p10 = scmp.lt.s32.totalorder %s769_s6, %s765_s14 }
  0x2d   : > { %333 = vperm.xlu0 %704, %v295_v5   ;;  %v302_v17 = vadd.f32 %v301_v16, %v300_v15 }
  0x2e   : > { %p767_p6 = pnand %p766_p5, %p914_p9  ;;  %p772_p13 = por %p771_p10, %p770_p8 }
  0x2f   : > { %v303_v18 = vrot.slane %v302_v17, 2 }
  0x30   : > { %p768_p7 = pneg %p767_p6 }
  0x31   : > { %385 = vperm.xlu2 %706, %v375_v6   ;;  %v304_v19 = vadd.f32 %v303_v18, %v302_v17 }
  0x32   : > { %p773_p0 = pnand %p772_p13, %p768_p7 }
  0x33   : > { %v305_v20 = vrot.slane %v304_v19, 1 }
  0x34   : > { %395 = vperm.xlu1 %705, %v377_v7  }
  0x35   : > { %390 = vperm.xlu0 %704, %v376_v8   ;;  %v306_v21 = vadd.f32 %v305_v20, %v304_v19 }
  0x37   : > { %v307_v22 = vmul.f32 0.03125, %v306_v21 }
  0x39   : > { %v308_v23 = vsub.f32 %v972_v9, %v307_v22  ;;  %v309_v24 = vsub.f32 %v975_v10, %v307_v22  ;;  %v310_v25 = vsub.f32 %v980_v12, %v307_v22  ;;  %v311_v29 = vsub.f32 %v984_v14, %v307_v22 }
  0x3b   : > { %v312_v26 = vmul.f32 %v308_v23, %v308_v23  ;;  %v313_v27 = vmul.f32 %v309_v24, %v309_v24  ;;  %v314_v28 = vmul.f32 %v310_v25, %v310_v25  ;;  %v315_v31 = vmul.f32 %v311_v29, %v311_v29 }
  0x3d   : > { %v316_v30 = vadd.f32 %v313_v27, %v312_v26 }
  0x3f   : > { %v317_v32 = vadd.f32 %v316_v30, %v314_v28  ;;  %v293_v28 = vld [vmem:[%s996_s9 + $0x18] sm:$0xff] }
  0x41   : > { %v318_v33 = vadd.f32 %v317_v32, %v315_v31 }
  0x43   : > { %v319_v34 = vrot.slane %v318_v33, 4 }
  0x45   : > { %v320_v41 = vadd.f32 %v319_v34, %v318_v33 }
  0x47   : > { %v321_v42 = vrot.slane %v320_v41, 2 }
  0x49   : > { %v322_v43 = vadd.f32 %v321_v42, %v320_v41 }
  0x4b   : > { %v323_v44 = vrot.slane %v322_v43, 1 }
  0x4d   : > { %v324_v45 = vadd.f32 %v323_v44, %v322_v43  ;;  %v469_v43 = vsub.f32 %v984_v14, %v293_v28 }
  0x4f   : > { %v325_v46 = vmul.f32 0.03125, %v324_v45 }
  0x51   : > { %v359_v47 = vadd.f32 1e-05, %v325_v46 }
  0x53   : > { %707 = vrsqrt.f32 %v359_v47  ;;  %vm366_vm0 = vweird.f32 %v359_v47 }
  0x59   : > { %v708_v50 = vpop.eup %707 }
  0x5a   : > { %v361_v51 = vmul.f32 %v708_v50, %v359_v47  ;;  %vm367_vm1 = vweird.f32 %v708_v50 }
  0x5b   : > { %vm368_vm2 = vmor %vm366_vm0, %vm367_vm1 }
  0x5c   : > { %v362_v56 = vmul.f32 %v708_v50, %v361_v51 }
  0x5e   : > { %v363_v61 = vmul.f32 0.5, %v362_v56 }
  0x60   : > { %v364_v0 = vsub.f32 1.5, %v363_v61 }
  0x62   : > { %v365_v3 = vmul.f32 %v708_v50, %v364_v0 }
  0x64   : > { %v369_v6 = vsel %vm368_vm2, %v708_v50, %v365_v3 }
  0x83   : > { %v381_v11 = vpop.permute.xlu2 %380 }
  0x8b   : > { %v386_v16 = vpop.permute.xlu2 %385 }
  0x96   : > { %v339_v48 = vpop.permute.xlu1 %338 }
  0x97   : > { %v329_v49 = vpop.permute.xlu0 %328  ;;  %v348_v57 = vmul.f32 %v339_v48, %v310_v25 }
  0x98   : > { %v346_v53 = vmul.f32 %v329_v49, %v308_v23 }
  0x9e   : > { %v344_v55 = vpop.permute.xlu1 %343 }
  0x9f   : > { %v334_v52 = vpop.permute.xlu0 %333  ;;  %v349_v59 = vmul.f32 %v344_v55, %v311_v29 }
  0xa0   : > { %v347_v54 = vmul.f32 %v334_v52, %v309_v24 }
  0xa2   : > { %v350_v58 = vadd.f32 %v347_v54, %v346_v53 }
  0xa4   : > { %v351_v60 = vadd.f32 %v350_v58, %v348_v57 }
  0xa6   : > { %v352_v62 = vadd.f32 %v351_v60, %v349_v59  ;;  %v396_v18 = vpop.permute.xlu1 %395 }
  0xa7   : > { %v391_v19 = vpop.permute.xlu0 %390 }
  0xa8   : > { %v353_v63 = vrot.slane %v352_v62, 4 }
  0xaa   : > { %v354_v1 = vadd.f32 %v353_v63, %v352_v62 }
  0xac   : > { %v355_v2 = vrot.slane %v354_v1, 2 }
  0xae   : > { %v356_v4 = vadd.f32 %v355_v2, %v354_v1 }
  0xb0   : > { %v357_v5 = vrot.slane %v356_v4, 1 }
  0xb2   : > { %v358_v7 = vadd.f32 %v357_v5, %v356_v4 }
  0xb4   : > { %v370_v8 = vmul.f32 %v369_v6, %v358_v7 }
  0xb6   : > { %v371_v13 = vsub.f32 0.0, %v370_v8 }
  0xb8   : > { %v372_v15 = vmul.f32 1.442695, %v371_v13 }
  0xba   : > { %709 = vpow2.f32 %v372_v15 }
  0xc0   : > { %v710_v17 = vpop.eup %709 }
  0xc1   : > { %v401_v20 = vmul.f32 %v710_v17, %v396_v18  ;;  %v400_v21 = vmul.f32 %v710_v17, %v391_v19  ;;  %v398_v22 = vmul.f32 %v710_v17, %v381_v11  ;;  %v399_v23 = vmul.f32 %v710_v17, %v386_v16 }
  0xc3   : > { %v405_v24 = vadd.f32 1.0, %v401_v20  ;;  %v404_v25 = vadd.f32 1.0, %v400_v21  ;;  %v402_v26 = vadd.f32 1.0, %v398_v22  ;;  %v1013_v27 = vadd.f32 1.0, %v399_v23 }
  0xc5   : > { %711 = vrcp.f32 %v405_v24  ;;  %v460_v29 = vand.u32 2147483647, %v405_v24  ;;  %v462_v30 = vand.u32 2147483648, %v405_v24  ;;  %v445_v32 = vand.u32 2147483647, %v404_v25 }
  0xc6   : > { %713 = vrcp.f32 %v404_v25  ;;  %v447_v33 = vand.u32 2147483648, %v404_v25  ;;  %vm456_vm3 = vweird.f32 %v405_v24  ;;  %vm441_vm4 = vweird.f32 %v404_v25 }
  0xc7   : > { %715 = vrcp.f32 %v402_v26  ;;  %vm1018_vm5 = vcmp.eq.f32.partialorder %v460_v29, 8.507059e+37  ;;  %v463_v47 = vor.u32 1.1754944e-38, %v462_v30  ;;  %vm1022_vm6 = vcmp.eq.f32.partialorder %v445_v32, 8.507059e+37 }
  0xc8   : > { %717 = vrcp.f32 %v1013_v27  ;;  %v448_v52 = vor.u32 1.1754944e-38, %v447_v33  ;;  %vm411_vm7 = vweird.f32 %v402_v26  ;;  %v415_v56 = vand.u32 2147483647, %v402_v26 }
  0xc9   : > { %v417_v57 = vand.u32 2147483648, %v402_v26  ;;  %vm426_vm12 = vweird.f32 %v1013_v27  ;;  %v430_v62 = vand.u32 2147483647, %v1013_v27  ;;  %v432_v63 = vand.u32 2147483648, %v1013_v27 }
  0xca   : > { %vm416_vm0 = vcmp.eq.f32.partialorder %v415_v56, 8.507059e+37 }
  0xcb   : > { %v712_v31 = vpop.eup %711  ;;  %v418_v5 = vor.u32 1.1754944e-38, %v417_v57  ;;  %v433_v16 = vor.u32 1.1754944e-38, %v432_v63  ;;  %vm431_vm2 = vcmp.eq.f32.partialorder %v430_v62, 8.507059e+37 }
  0xcc   : > { %v714_v34 = vpop.eup %713  ;;  %v452_v41 = vmul.f32 %v712_v31, %v405_v24  ;;  %vm457_vm8 = vweird.f32 %v712_v31 }
  0xcd   : > { %v716_v42 = vpop.eup %715  ;;  %v437_v44 = vmul.f32 %v714_v34, %v404_v25  ;;  %vm442_vm9 = vweird.f32 %v714_v34  ;;  %vm458_vm11 = vmor %vm456_vm3, %vm457_vm8 }
  0xce   : > { %v453_v45 = vsub.f32 1.0, %v452_v41  ;;  %v407_v48 = vmul.f32 %v716_v42, %v402_v26  ;;  %v718_v49 = vpop.eup %717  ;;  %vm412_vm10 = vweird.f32 %v716_v42  ;;  %vm443_vm13 = vmor %vm441_vm4, %vm442_vm9 }
  0xcf   : > { %v438_v50 = vsub.f32 1.0, %v437_v44  ;;  %v422_v54 = vmul.f32 %v718_v49, %v1013_v27  ;;  %vm427_vm14 = vweird.f32 %v718_v49  ;;  %vm413_vm15 = vmor %vm411_vm7, %vm412_vm10 }
  0xd0   : > { %v454_v53 = vmul.f32 %v712_v31, %v453_v45  ;;  %v408_v14 = vsub.f32 1.0, %v407_v48  ;;  %vm428_vm1 = vmor %vm426_vm12, %vm427_vm14 }
  0xd1   : > { %v439_v55 = vmul.f32 %v714_v34, %v438_v50  ;;  %v423_v60 = vsub.f32 1.0, %v422_v54 }
  0xd2   : > { %v455_v58 = vadd.f32 %v712_v31, %v454_v53  ;;  %v409_v59 = vmul.f32 %v716_v42, %v408_v14 }
  0xd3   : > { %v440_v61 = vadd.f32 %v714_v34, %v439_v55  ;;  %v424_v2 = vmul.f32 %v718_v49, %v423_v60 }
  0xd4   : > { %v459_v0 = vsel %vm458_vm11, %v712_v31, %v455_v58  ;;  %v410_v1 = vadd.f32 %v716_v42, %v409_v59 }
  0xd5   : > { %v464_v3 = vsel %vm1018_vm5, %v463_v47, %v459_v0  ;;  %v444_v4 = vsel %vm443_vm13, %v714_v34, %v440_v61  ;;  %v425_v11 = vadd.f32 %v718_v49, %v424_v2 }
  0xd6   : > { %v473_v6 = vmul.f32 %v469_v43, %v464_v3  ;;  %v449_v7 = vsel %vm1022_vm6, %v448_v52, %v444_v4  ;;  %v414_v8 = vsel %vm413_vm15, %v716_v42, %v410_v1 }
  0xd7   : > { %v472_v13 = vmul.f32 %v468_v40, %v449_v7  ;;  %v419_v15 = vsel %vm416_vm0, %v418_v5, %v414_v8  ;;  %v429_v19 = vsel %vm428_vm1, %v718_v49, %v425_v11 }
  0xd8   : > { %v477_v17 = vadd.f32 %v473_v6, %v293_v28  ;;  %v470_v18 = vmul.f32 %v466_v38, %v419_v15  ;;  %v434_v40 = vsel %vm431_vm2, %v433_v16, %v429_v19 }
  0xd9   : > { %v476_v12 = vadd.f32 %v472_v13, %v1005_v37  ;;  %v471_v21 = vmul.f32 %v467_v39, %v434_v40 }
  0xda   : > { %481 = vst [vmem:[%s272_s11 + $0x18] sm:$0xff] %v477_v17  ;;  %v474_v20 = vadd.f32 %v470_v18, %v999_v35 }
  0xdb   : > { %480 = vst [vmem:[%s272_s11 + $0x10] sm:$0xff] %v476_v12  ;;  %v475_v9 = vadd.f32 %v471_v21, %v1002_v36 }
  0xdc   : > { %478 = vst [vmem:[%s272_s11] sm:$0xff] %v474_v20 }
  0xdd   : > { %479 = vst [vmem:[%s272_s11 + $0x8] sm:$0xff] %v475_v9 }
  0xde   : > { %776 = shalt.err (!%p773_p0)
}
  0xdf   : > { %s836_s24 = smov 128   ;;  %s837_s9 = smov 8  }
  0xe0   : > { %639 = dma.vmem_to_hbm [thread:$0]  (%p914_p9), %s497_s27, 512, %s499_s12, %s483_s26, %s836_s24, %s836_s24, %s837_s9  }
  0xe1 PF: > { %s513_s5 = sand.u32 1, %s811_s15   ;;  %p646_p1 = pnand %p617_p12, %p921_p11 }
  0xe2   : > { %s514_s18 = scalar_lea.sflag [#allocation4], %s513_s5 }
  0xe3   : > { %p647_p2 = pneg %p646_p1 }
  0xe5   : > { %806 = dma.done.wait (%p647_p2), %s514_s18, 512  }
  0xe6   : > { %808 = vsyncadd (%p647_p2), %s514_s18, 4294966784  ;;  %s20_s20 = sadd.s32 1, %s831_s20   ;;  %s1105_s15 = smov %s815_s16 }
  0xe7   : > { %p17_p3 = scmp.ge.s32.totalorder %s20_s20, 4   ;;  %s1106_s16 = smov %s819_s17 }
  0xe8   : > { %s1107_s17 = smov %s919_s29  ;;  %s1108_s18 = smov %s827_s19 }
  0xe9   : > { %s1109_s19 = smov %s1111_s23  ;;  %19 = sbr.rel (!%p17_p3) target bundleno = 6 (0x6), region = 87 }
  0xee   :  { %520 = vsyncpa [#allocation3], 1 }
  0xef   :  { %522 = vsyncpa [#allocation3 + $0x1], 1 }
  0xf0   :  { %523 = vsyncpa [#allocation4], 1 }
  0xf1   :  { %525 = vsyncpa [#allocation4 + $0x1], 1 }

</bundles_post_ra>
